<compile_context>
chip_gen: v7x
topology: tpu7x:2x2x1
jax: 0.10.0
libtpu: 0.0.40
codegen_flags: <defaults>
</compile_context>

<pallas_src>
import math

import jax
import jax.numpy as jnp
from jax.experimental import pallas as pl
from jax.experimental.pallas import tpu as pltpu

HIDDEN = 128  # per-branch hidden width from the reference module


def actor_critic_kernel(state_ref, action_ref, inv_var_ref,
                        w1_ref, b1_ref, w2_ref, b2_ref, w3_ref, b3_ref,
                        out_ref):
    """Fused actor+critic MLP + diagonal-MVN quadratic term for one batch tile."""
    cdt = w1_ref.dtype                                   # matmul-input dtype (f32 or bf16)
    A = action_ref.shape[1]
    TB = out_ref.shape[0]
    W = out_ref.shape[1]                                  # 128 (lane-dense output block)

    x = state_ref[...].astype(cdt)                        # (TB, S_pad)

    # layer 1 : x @ [aw1 | cw1]  -> [actor_h1 | critic_h1]
    h = jnp.dot(x, w1_ref[...], preferred_element_type=jnp.float32) + b1_ref[...]
    h = jnp.tanh(h.astype(cdt))                           # bf16 tanh on v6e/v7x, f32 otherwise

    # layer 2 : [h|c] @ blockdiag(aw2, cw2)
    h = jnp.dot(h, w2_ref[...], preferred_element_type=jnp.float32) + b2_ref[...]
    h = jnp.tanh(h.astype(cdt))

    # head (N=128): mean pre-activation in cols [0,A), value in col A
    head = jnp.dot(h, w3_ref[...], preferred_element_type=jnp.float32) + b3_ref[...]

    action_mean = jnp.tanh(head[:, :A])                   # (TB, A) - tanh only on actor head
    value = head[:, A:A + 1]                              # (TB, 1) - no tanh on critic head

    # diagonal-MVN quadratic term (constants hoisted to wrapper)
    diff = action_ref[...] - action_mean
    quad = jnp.sum(diff * diff * inv_var_ref[...], axis=-1, keepdims=True)   # (TB, 1)

    # lane-dense (TB, 128) store: col 0 = -0.5*quad, col 1 = value, rest 0
    lane = jax.lax.broadcasted_iota(jnp.int32, (TB, W), 1)
    out_ref[...] = jnp.where(lane == 0, -0.5 * quad,
                             jnp.where(lane == 1, value, 0.0))


def _init_linear(key, fan_in, fan_out):
    # Mimics nn.Linear default init U(-1/sqrt(fan_in), 1/sqrt(fan_in)).
    kw, kb = jax.random.split(key)
    bound = 1.0 / math.sqrt(fan_in)
    w = jax.random.uniform(kw, (fan_in, fan_out), jnp.float32, -bound, bound)
    b = jax.random.uniform(kb, (1, fan_out), jnp.float32, -bound, bound)
    return w, b


def make_actor_critic_params(key, state_dim, action_dim, hidden=HIDDEN):
    ks = jax.random.split(key, 6)
    aw1, ab1 = _init_linear(ks[0], state_dim, hidden)
    aw2, ab2 = _init_linear(ks[1], hidden, hidden)
    aw3, ab3 = _init_linear(ks[2], hidden, action_dim)
    cw1, cb1 = _init_linear(ks[3], state_dim, hidden)
    cw2, cb2 = _init_linear(ks[4], hidden, hidden)
    cw3, cb3 = _init_linear(ks[5], hidden, 1)
    return (aw1, ab1, aw2, ab2, aw3, ab3, cw1, cb1, cw2, cb2, cw3, cb3)


def default_compute_dtype():
    """bf16 MXU/EUP inputs on v6e/v7x; f32 elsewhere (v5e has no bf16 VPU/EUP path)."""
    try:
        kind = jax.devices()[0].device_kind.lower()
    except Exception:
        return jnp.float32
    if any(tag in kind for tag in ("v6", "v7", "7x")):
        return jnp.bfloat16
    return jnp.float32


def pack_actor_critic_params(params, state_dim, action_dim, hidden=HIDDEN,
                             compute_dtype=jnp.float32):
    """Pack the 12 weight/bias tensors into 3 fused weight slabs + 3 fused bias rows.

    Head slab is (2H, H) with actor-mean weights in cols [0,A) and the critic value
    weights in col A (requires A + 1 <= H).
    """
    (aw1, ab1, aw2, ab2, aw3, ab3, cw1, cb1, cw2, cb2, cw3, cb3) = params
    H = hidden
    A = action_dim
    S = state_dim
    assert A + 1 <= H, "critic value column is packed at lane index A (< 128)"
    S_pad = ((S + 7) // 8) * 8          # keep the layer-1 K slab (8,128)-tile aligned

    w1 = jnp.zeros((S_pad, 2 * H), jnp.float32)
    w1 = w1.at[:S, :H].set(aw1).at[:S, H:].set(cw1)

    w2 = jnp.zeros((2 * H, 2 * H), jnp.float32)
    w2 = w2.at[:H, :H].set(aw2).at[H:, H:].set(cw2)

    w3 = jnp.zeros((2 * H, H), jnp.float32)
    w3 = w3.at[:H, :A].set(aw3).at[H:, A:A + 1].set(cw3)

    b1 = jnp.concatenate([ab1, cb1], axis=1)              # (1, 2H)
    b2 = jnp.concatenate([ab2, cb2], axis=1)              # (1, 2H)
    b3 = jnp.zeros((1, H), jnp.float32)
    b3 = b3.at[:, :A].set(ab3).at[:, A:A + 1].set(cb3)

    cd = jnp.dtype(compute_dtype)
    # Weights carry the matmul-input dtype; biases stay f32 (added to the f32 accumulator).
    return (w1.astype(cd), b1, w2.astype(cd), b2, w3.astype(cd), b3)


def _pick_tile_b(batch, requested):
    """Large tiles amortize per-step overhead, but keep >=2 grid steps (v7x megacore)."""
    t = max(8, min(int(requested), 1024))
    t -= t % 8
    b8 = ((batch + 7) // 8) * 8
    t = min(t, b8)
    if b8 >= 16 and t > (b8 + 1) // 2:
        t = (((b8 + 1) // 2) + 7) // 8 * 8
    return max(t, 8)


def actor_critic_evaluate(state, action, action_var, packed_params, *, tile_b=512):
    """Pallas-backed ActorCritic.evaluate (continuous action space).

    Returns (action_logprobs (B,), state_values (B,1), dist_entropy (B,)).
    """
    w1, b1, w2, b2, w3, b3 = packed_params
    B, S = state.shape
    A = action.shape[1]
    S_pad, H2 = w1.shape
    H = w3.shape[1]

    # Zero-pad the state feature dim to the packed (multiple-of-8) width.
    if S_pad != S:
        state = jnp.pad(state, ((0, 0), (0, S_pad - S)))

    tb = _pick_tile_b(B, tile_b)
    b_pad = pl.cdiv(B, tb) * tb
    if b_pad != B:
        state = jnp.pad(state, ((0, b_pad - B), (0, 0)))
        action = jnp.pad(action, ((0, b_pad - B), (0, 0)))

    inv_var = (1.0 / action_var).reshape(1, A).astype(jnp.float32)

    w_bytes = jnp.dtype(w1.dtype).itemsize
    cost = pl.CostEstimate(
        flops=2 * b_pad * (S_pad * H2 + H2 * H2 + H2 * H),
        transcendentals=b_pad * (H2 + H2 + A),
        bytes_accessed=(4 * b_pad * (S_pad + A)                    # state + action in
                        + 4 * b_pad * H                            # lane-dense output
                        + w_bytes * (S_pad * H2 + H2 * H2 + H2 * H)
                        + 4 * (H2 + H2 + H + A)),                  # biases + inv_var
    )

    out = pl.pallas_call(
        actor_critic_kernel,
        out_shape=jax.ShapeDtypeStruct((b_pad, H), jnp.float32),
        grid=(b_pad // tb,),
        in_specs=[
            pl.BlockSpec((tb, S_pad), lambda i: (i, 0)),    # state tile
            pl.BlockSpec((tb, A), lambda i: (i, 0)),        # action tile
            pl.BlockSpec((1, A), lambda i: (0, 0)),         # 1/var        (VMEM-resident)
            pl.BlockSpec((S_pad, H2), lambda i: (0, 0)),    # layer-1 slab (resident)
            pl.BlockSpec((1, H2), lambda i: (0, 0)),        # layer-1 bias (resident)
            pl.BlockSpec((H2, H2), lambda i: (0, 0)),       # layer-2 slab (resident)
            pl.BlockSpec((1, H2), lambda i: (0, 0)),        # layer-2 bias (resident)
            pl.BlockSpec((H2, H), lambda i: (0, 0)),        # head slab    (resident)
            pl.BlockSpec((1, H), lambda i: (0, 0)),         # head bias    (resident)
        ],
        out_specs=pl.BlockSpec((tb, H), lambda i: (i, 0)),  # lane-dense 128-wide output
        compiler_params=pltpu.CompilerParams(
            dimension_semantics=("parallel",)),
        cost_estimate=cost,
    )(state, action, inv_var, w1, b1, w2, b2, w3, b3)

    # Batch-independent MVN terms, hoisted out of the kernel.
    log2pi = math.log(2.0 * math.pi)
    log_det = jnp.sum(jnp.log(action_var))
    logp = out[:B, 0] - 0.5 * (log_det + A * log2pi)
    values = out[:B, 1:2]
    entropy = jnp.broadcast_to(0.5 * (log_det + A * (1.0 + log2pi)), (B,))
    return logp, values, entropy


def reference_evaluate(state, action, action_var, params):
    (aw1, ab1, aw2, ab2, aw3, ab3, cw1, cb1, cw2, cb2, cw3, cb3) = params
    h = jnp.tanh(state @ aw1 + ab1)
    h = jnp.tanh(h @ aw2 + ab2)
    mean = jnp.tanh(h @ aw3 + ab3)
    c = jnp.tanh(state @ cw1 + cb1)
    c = jnp.tanh(c @ cw2 + cb2)
    val = c @ cw3 + cb3
    k = action.shape[-1]
    log2pi = math.log(2.0 * math.pi)
    log_det = jnp.sum(jnp.log(action_var))
    quad = jnp.sum((action - mean) ** 2 / action_var, axis=-1)
    logp = -0.5 * (quad + log_det + k * log2pi)
    ent = jnp.full((state.shape[0],), 0.5 * (log_det + k * (1.0 + log2pi)))
    return logp, val, ent


if __name__ == "__main__":
    state_dim, action_dim, batch = 8, 4, 8
    action_std_init = 0.6

    key = jax.random.PRNGKey(0)
    k_params, k_state, k_action = jax.random.split(key, 3)

    params = make_actor_critic_params(k_params, state_dim, action_dim)
    state = jax.random.normal(k_state, (batch, state_dim), jnp.float32)
    action = jax.random.normal(k_action, (batch, action_dim), jnp.float32)
    action_var = jnp.full((action_dim,), action_std_init * action_std_init, jnp.float32)

    r_logp, r_vals, r_ent = reference_evaluate(state, action, action_var, params)

    # f32 path: strict correctness check against the pure-JAX reference.
    packed_f32 = pack_actor_critic_params(params, state_dim, action_dim,
                                          compute_dtype=jnp.float32)
    logp, vals, ent = actor_critic_evaluate(state, action, action_var, packed_f32)
    jax.block_until_ready((logp, vals, ent))
    assert logp.shape == (batch,) and vals.shape == (batch, 1) and ent.shape == (batch,)
    assert jnp.allclose(logp, r_logp, atol=1e-3, rtol=1e-3)
    assert jnp.allclose(vals, r_vals, atol=1e-3, rtol=1e-3)
    assert jnp.allclose(ent, r_ent, atol=1e-3, rtol=1e-3)

    # Perf path: bf16 MXU inputs + bf16 tanh on v6e/v7x (looser sanity tolerance:
    # two stacked bf16 matmul+tanh layers accumulate rounding error).
    auto_dtype = default_compute_dtype()
    if jnp.dtype(auto_dtype) != jnp.dtype(jnp.float32):
        packed_auto = pack_actor_critic_params(params, state_dim, action_dim,
                                               compute_dtype=auto_dtype)
        logp2, vals2, ent2 = actor_critic_evaluate(state, action, action_var, packed_auto)
        jax.block_until_ready((logp2, vals2, ent2))
        assert jnp.allclose(logp2, r_logp, atol=2e-1, rtol=1e-1)
        assert jnp.allclose(vals2, r_vals, atol=5e-2, rtol=5e-2)
        assert jnp.allclose(ent2, r_ent, atol=1e-3, rtol=1e-3)

    print("KERNEL_OK")
</pallas_src>

<mosaic_0001>
module attributes {stable_mosaic.version = 11 : i64} {
  func.func @actor_critic_kernel(%arg0: i32, %arg1: memref<8x8xf32, #tpu.memory_space<vmem>>, %arg2: memref<8x4xf32, #tpu.memory_space<vmem>>, %arg3: memref<1x4xf32, #tpu.memory_space<vmem>>, %arg4: memref<8x256xf32, #tpu.memory_space<vmem>>, %arg5: memref<1x256xf32, #tpu.memory_space<vmem>>, %arg6: memref<256x256xf32, #tpu.memory_space<vmem>>, %arg7: memref<1x256xf32, #tpu.memory_space<vmem>>, %arg8: memref<256x128xf32, #tpu.memory_space<vmem>>, %arg9: memref<1x128xf32, #tpu.memory_space<vmem>>, %arg10: memref<8x128xf32, #tpu.memory_space<vmem>>) attributes {dimension_semantics = [#tpu.dimension_semantics<parallel>], iteration_bounds = array<i64: 1>, scalar_prefetch = 0 : i64, scratch_operands = 0 : i64, tpu.core_type = #tpu.core_type<tc>, window_params = [{transform_indices = @transform_0, window_bounds = array<i64: 8, 8>}, {transform_indices = @transform_1, window_bounds = array<i64: 8, 4>}, {pipeline_mode = #tpu.pipeline_mode<synchronous>, transform_indices = @transform_2, window_bounds = array<i64: 1, 4>}, {pipeline_mode = #tpu.pipeline_mode<synchronous>, transform_indices = @transform_3, window_bounds = array<i64: 8, 256>}, {pipeline_mode = #tpu.pipeline_mode<synchronous>, transform_indices = @transform_4, window_bounds = array<i64: 1, 256>}, {pipeline_mode = #tpu.pipeline_mode<synchronous>, transform_indices = @transform_5, window_bounds = array<i64: 256, 256>}, {pipeline_mode = #tpu.pipeline_mode<synchronous>, transform_indices = @transform_6, window_bounds = array<i64: 1, 256>}, {pipeline_mode = #tpu.pipeline_mode<synchronous>, transform_indices = @transform_7, window_bounds = array<i64: 256, 128>}, {pipeline_mode = #tpu.pipeline_mode<synchronous>, transform_indices = @transform_8, window_bounds = array<i64: 1, 128>}, {transform_indices = @transform_9, window_bounds = array<i64: 8, 128>}]} {
    %c0 = arith.constant 0 : index
    %c0_0 = arith.constant 0 : index
    %0 = vector.load %arg1[%c0, %c0_0] : memref<8x8xf32, #tpu.memory_space<vmem>>, vector<8x8xf32>
    %c0_1 = arith.constant 0 : index
    %c0_2 = arith.constant 0 : index
    %1 = vector.load %arg4[%c0_1, %c0_2] : memref<8x256xf32, #tpu.memory_space<vmem>>, vector<8x256xf32>
    %cst = arith.constant dense<0.000000e+00> : vector<8x256xf32>
    %2 = tpu.matmul %0, %1, %cst {dimension_numbers = #tpu.dot_dimension_numbers<[1], [0], [0], [1], [0, 0, 1, 1], [], []>} : vector<8x8xf32>, vector<8x256xf32>, vector<8x256xf32> -> vector<8x256xf32>
    %c0_3 = arith.constant 0 : index
    %c0_4 = arith.constant 0 : index
    %3 = vector.load %arg5[%c0_3, %c0_4] : memref<1x256xf32, #tpu.memory_space<vmem>>, vector<1x256xf32>
    %4 = vector.broadcast %3 : vector<1x256xf32> to vector<8x256xf32>
    %5 = arith.addf %2, %4 : vector<8x256xf32>
    %6 = math.tanh %5 : vector<8x256xf32>
    %c0_5 = arith.constant 0 : index
    %c0_6 = arith.constant 0 : index
    %7 = vector.load %arg6[%c0_5, %c0_6] : memref<256x256xf32, #tpu.memory_space<vmem>>, vector<256x256xf32>
    %cst_7 = arith.constant dense<0.000000e+00> : vector<8x256xf32>
    %8 = tpu.matmul %6, %7, %cst_7 {dimension_numbers = #tpu.dot_dimension_numbers<[1], [0], [0], [1], [0, 0, 1, 1], [], []>} : vector<8x256xf32>, vector<256x256xf32>, vector<8x256xf32> -> vector<8x256xf32>
    %c0_8 = arith.constant 0 : index
    %c0_9 = arith.constant 0 : index
    %9 = vector.load %arg7[%c0_8, %c0_9] : memref<1x256xf32, #tpu.memory_space<vmem>>, vector<1x256xf32>
    %10 = vector.broadcast %9 : vector<1x256xf32> to vector<8x256xf32>
    %11 = arith.addf %8, %10 : vector<8x256xf32>
    %12 = math.tanh %11 : vector<8x256xf32>
    %c0_10 = arith.constant 0 : index
    %c0_11 = arith.constant 0 : index
    %13 = vector.load %arg8[%c0_10, %c0_11] : memref<256x128xf32, #tpu.memory_space<vmem>>, vector<256x128xf32>
    %cst_12 = arith.constant dense<0.000000e+00> : vector<8x128xf32>
    %14 = tpu.matmul %12, %13, %cst_12 {dimension_numbers = #tpu.dot_dimension_numbers<[1], [0], [0], [1], [0, 0, 1, 1], [], []>} : vector<8x256xf32>, vector<256x128xf32>, vector<8x128xf32> -> vector<8x128xf32>
    %c0_13 = arith.constant 0 : index
    %c0_14 = arith.constant 0 : index
    %15 = vector.load %arg9[%c0_13, %c0_14] : memref<1x128xf32, #tpu.memory_space<vmem>>, vector<1x128xf32>
    %16 = vector.broadcast %15 : vector<1x128xf32> to vector<8x128xf32>
    %17 = arith.addf %14, %16 : vector<8x128xf32>
    %18 = vector.extract_strided_slice %17 {offsets = [0, 0], sizes = [8, 4], strides = [1, 1]} : vector<8x128xf32> to vector<8x4xf32>
    %19 = math.tanh %18 : vector<8x4xf32>
    %20 = vector.extract_strided_slice %17 {offsets = [0, 4], sizes = [8, 1], strides = [1, 1]} : vector<8x128xf32> to vector<8x1xf32>
    %c0_15 = arith.constant 0 : index
    %c0_16 = arith.constant 0 : index
    %21 = vector.load %arg2[%c0_15, %c0_16] : memref<8x4xf32, #tpu.memory_space<vmem>>, vector<8x4xf32>
    %22 = arith.subf %21, %19 : vector<8x4xf32>
    %23 = arith.mulf %22, %22 : vector<8x4xf32>
    %c0_17 = arith.constant 0 : index
    %c0_18 = arith.constant 0 : index
    %24 = vector.load %arg3[%c0_17, %c0_18] : memref<1x4xf32, #tpu.memory_space<vmem>>, vector<1x4xf32>
    %25 = vector.broadcast %24 : vector<1x4xf32> to vector<8x4xf32>
    %26 = arith.mulf %23, %25 : vector<8x4xf32>
    %cst_19 = arith.constant dense<0.000000e+00> : vector<8xf32>
    %27 = vector.multi_reduction <add>, %26, %cst_19 [1] : vector<8x4xf32> to vector<8xf32>
    %28 = vector.shape_cast %27 : vector<8xf32> to vector<8x1xf32>
    %29 = tpu.iota {dimensions = array<i32: 1>} : vector<8x128xi32>
    %c0_i32 = arith.constant 0 : i32
    %30 = vector.broadcast %c0_i32 : i32 to vector<8x128xi32>
    %31 = arith.cmpi eq, %29, %30 : vector<8x128xi32>
    %cst_20 = arith.constant -5.000000e-01 : f32
    %32 = vector.broadcast %cst_20 : f32 to vector<8x1xf32>
    %33 = arith.mulf %32, %28 : vector<8x1xf32>
    %c1_i32 = arith.constant 1 : i32
    %34 = vector.broadcast %c1_i32 : i32 to vector<8x128xi32>
    %35 = arith.cmpi eq, %29, %34 : vector<8x128xi32>
    %cst_21 = arith.constant 0.000000e+00 : f32
    %36 = vector.shape_cast %20 : vector<8x1xf32> to vector<8x1xf32>
    %37 = vector.broadcast %36 : vector<8x1xf32> to vector<8x128xf32>
    %38 = vector.broadcast %cst_21 : f32 to vector<8x128xf32>
    %39 = arith.select %35, %37, %38 : vector<8x128xi1>, vector<8x128xf32>
    %40 = vector.shape_cast %33 : vector<8x1xf32> to vector<8x1xf32>
    %41 = vector.broadcast %40 : vector<8x1xf32> to vector<8x128xf32>
    %42 = arith.select %31, %41, %39 : vector<8x128xi1>, vector<8x128xf32>
    %c0_22 = arith.constant 0 : index
    %c0_23 = arith.constant 0 : index
    %43 = vector.load %arg10[%c0_22, %c0_23] : memref<8x128xf32, #tpu.memory_space<vmem>>, vector<8x128xf32>
    tpu.vector_store %arg10[%c0_22, %c0_23], %42 {strides = array<i32>} : memref<8x128xf32, #tpu.memory_space<vmem>>, vector<8x128xf32>,
    return
  }
  func.func @transform_0(%arg0: i32) -> (i32, i32) {
    %c0_i32 = arith.constant 0 : i32
    %c0_i32_0 = arith.constant 0 : i32
    return %arg0, %c0_i32 : i32, i32
  }
  func.func @transform_1(%arg0: i32) -> (i32, i32) {
    %c0_i32 = arith.constant 0 : i32
    %c0_i32_0 = arith.constant 0 : i32
    return %arg0, %c0_i32 : i32, i32
  }
  func.func @transform_2(%arg0: i32) -> (i32, i32) {
    %c0_i32 = arith.constant 0 : i32
    %c0_i32_0 = arith.constant 0 : i32
    %c0_i32_1 = arith.constant 0 : i32
    return %c0_i32, %c0_i32_0 : i32, i32
  }
  func.func @transform_3(%arg0: i32) -> (i32, i32) {
    %c0_i32 = arith.constant 0 : i32
    %c0_i32_0 = arith.constant 0 : i32
    %c0_i32_1 = arith.constant 0 : i32
    return %c0_i32, %c0_i32_0 : i32, i32
  }
  func.func @transform_4(%arg0: i32) -> (i32, i32) {
    %c0_i32 = arith.constant 0 : i32
    %c0_i32_0 = arith.constant 0 : i32
    %c0_i32_1 = arith.constant 0 : i32
    return %c0_i32, %c0_i32_0 : i32, i32
  }
  func.func @transform_5(%arg0: i32) -> (i32, i32) {
    %c0_i32 = arith.constant 0 : i32
    %c0_i32_0 = arith.constant 0 : i32
    %c0_i32_1 = arith.constant 0 : i32
    return %c0_i32, %c0_i32_0 : i32, i32
  }
  func.func @transform_6(%arg0: i32) -> (i32, i32) {
    %c0_i32 = arith.constant 0 : i32
    %c0_i32_0 = arith.constant 0 : i32
    %c0_i32_1 = arith.constant 0 : i32
    return %c0_i32, %c0_i32_0 : i32, i32
  }
  func.func @transform_7(%arg0: i32) -> (i32, i32) {
    %c0_i32 = arith.constant 0 : i32
    %c0_i32_0 = arith.constant 0 : i32
    %c0_i32_1 = arith.constant 0 : i32
    return %c0_i32, %c0_i32_0 : i32, i32
  }
  func.func @transform_8(%arg0: i32) -> (i32, i32) {
    %c0_i32 = arith.constant 0 : i32
    %c0_i32_0 = arith.constant 0 : i32
    %c0_i32_1 = arith.constant 0 : i32
    return %c0_i32, %c0_i32_0 : i32, i32
  }
  func.func @transform_9(%arg0: i32) -> (i32, i32) {
    %c0_i32 = arith.constant 0 : i32
    %c0_i32_0 = arith.constant 0 : i32
    return %arg0, %c0_i32 : i32, i32
  }
}

</mosaic_0001>

<bundles_post_ra>
// kernel: tpu_custom_call.1
= control target key start
LH: loop header
LB: loop body
LE: loop exit
PB: predicated region body
PF: predicated region fallthrough
CT: control target
= control target key end

     0   :  { %14 = vsyncpa [#allocation3], 0  ;;  %s847_s0 = inlined_call_operand.hbm [shape: f32[8,8], index: 0, kind: input, shape index: {}]   ;;  %s848_s1 = inlined_call_operand.vmem [shape: f32[8,4], index: 1, kind: input, shape index: {}]   ;;  %s849_s2 = inlined_call_operand.vmem [shape: f32[1,4], index: 2, kind: input, shape index: {}]   ;;  %s850_s3 = inlined_call_operand.vmem [shape: f32[8,256], index: 3, kind: input, shape index: {}]   ;;  %s851_s4 = inlined_call_operand.vmem [shape: f32[1,256], index: 4, kind: input, shape index: {}]   ;;  %s852_s5 = inlined_call_operand.hbm [shape: f32[256,256], index: 5, kind: input, shape index: {}]   ;;  %s853_s6 = inlined_call_operand.vmem [shape: f32[1,256], index: 6, kind: input, shape index: {}]   ;;  %s854_s7 = inlined_call_operand.hbm [shape: f32[256,128], index: 7, kind: input, shape index: {}]   ;;  %s855_s8 = inlined_call_operand.vmem [shape: f32[1,128], index: 8, kind: input, shape index: {}]   ;;  %s856_s9 = inlined_call_operand.hbm [shape: f32[8,128], index: 9, kind: output, shape index: {}]  }
   0x1   :  { %15 = vsyncpa [#allocation6], 0 }
   0x2   :  { %16 = vsyncpa [#allocation4], 0  ;;  %s716_s30 = smov [#allocation5]   ;;  %s622_s13 = scalar_lea.hbm %s852_s5, 8192 }
   0x3   :  { %s40_s10 = sshll.u32 %s716_s30, 4  ;;  %p623_p0 = scmp.ne.s32.totalorder %s852_s5, %s622_s13  ;;  %s41_s10 = int_to_ptr.vmem [resolvable:$true] %s40_s10 }
   0x4   :  { %p626_p1 = scmp.lt.u32.totalorder %s622_s13, %s852_s5 }
   0x6   :  { %p628_p2 = pnand %p626_p1, %p623_p0 }
   0x8   :  { %631 = shalt.err (!%p628_p2)
}
   0x9   :  { %s632_s18 = scalar_lea.vmem %s41_s10, 8192  ;;  %p637_p4 = scmp.lt.s32.totalorder %s41_s10, %s41_s10 }
   0xa   :  { %p633_p3 = scmp.ne.s32.totalorder %s41_s10, %s632_s18  ;;  %p638_p5 = scmp.lt.s32.totalorder %s632_s18, %s632_s18 }
   0xc   :  { %p639_p6 = por %p638_p5, %p637_p4 }
   0xe   :  { %p640_p7 = pnand %p639_p6, %p633_p3 }
  0x10   :  { %643 = shalt.err (!%p640_p7)
}
  0x11   :  { %s717_s19 = smov 256   ;;  %s718_s20 = smov 16  }
  0x12   :  { %46 = dma.hbm_to_vmem [thread:$0]  %s852_s5, 8192, %s41_s10, [#allocation6], %s717_s19, %s717_s19, %s718_s20  }
  0x13   :  { %s719_s23 = smov [#allocation2]   ;;  %s720_s25 = smov [#allocation7]  }
  0x14   :  { %s23_s24 = sshll.u32 %s719_s23, 4  ;;  %s54_s26 = sshll.u32 %s720_s25, 4  ;;  %s24_s24 = int_to_ptr.vmem [resolvable:$true] %s23_s24  ;;  %s55_s26 = int_to_ptr.vmem [resolvable:$true] %s54_s26 }
  0x15   :  { %s644_s29 = scalar_lea.hbm %s847_s0, 128 }
  0x16   :  { %p645_p8 = scmp.ne.s32.totalorder %s847_s0, %s644_s29  ;;  %p648_p9 = scmp.lt.u32.totalorder %s644_s29, %s847_s0 }
  0x18   :  { %p650_p10 = pnand %p648_p9, %p645_p8 }
  0x1a   :  { %653 = shalt.err (!%p650_p10)
}
  0x1b   :  { %s654_s5 = scalar_lea.vmem %s24_s24, 128  ;;  %p659_p12 = scmp.lt.s32.totalorder %s24_s24, %s24_s24 }
  0x1c   :  { %p655_p11 = scmp.ne.s32.totalorder %s24_s24, %s654_s5  ;;  %p660_p13 = scmp.lt.s32.totalorder %s654_s5, %s654_s5 }
  0x1e   :  { %p661_p0 = por %p660_p13, %p659_p12 }
  0x20   :  { %p662_p1 = pnand %p661_p0, %p655_p11 }
  0x22   :  { %665 = shalt.err (!%p662_p1)
}
  0x23   :  { %26 = dma.hbm_to_vmem [thread:$0]  %s847_s0, 128, %s24_s24, [#allocation3]  }
  0x24   :  { %s666_s17 = scalar_lea.hbm %s854_s7, 4096 }
  0x25   :  { %p667_p2 = scmp.ne.s32.totalorder %s854_s7, %s666_s17  ;;  %p670_p3 = scmp.lt.u32.totalorder %s666_s17, %s854_s7 }
  0x27   :  { %p672_p4 = pnand %p670_p3, %p667_p2 }
  0x29   :  { %675 = shalt.err (!%p672_p4)
}
  0x2a   :  { %s676_s22 = scalar_lea.vmem %s55_s26, 4096  ;;  %p681_p6 = scmp.lt.s32.totalorder %s55_s26, %s55_s26 }
  0x2b   :  { %p677_p5 = scmp.ne.s32.totalorder %s55_s26, %s676_s22  ;;  %p682_p7 = scmp.lt.s32.totalorder %s676_s22, %s676_s22 }
  0x2d   :  { %p683_p8 = por %p682_p7, %p681_p6 }
  0x2f   :  { %p684_p9 = pnand %p683_p8, %p677_p5 }
  0x31   :  { %687 = shalt.err (!%p684_p9)
}
  0x32   :  { %s721_s0 = smov 128   ;;  %s722_s23 = smov 8  }
  0x33   :  { %60 = dma.hbm_to_vmem [thread:$0]  %s854_s7, 4096, %s55_s26, [#allocation6], %s721_s0, %s721_s0, %s722_s23  }
  0x34   :  { %710 = dma.done.wait [#allocation3], 128  }
  0x35   :  { %711 = vsyncadd [#allocation3], 4294967168 }
  0x36   :  { %712 = dma.done.wait [#allocation6], 12288  }
  0x37   :  { %713 = vsyncadd [#allocation6], 4294955008  ;;  %v723_v0 = vmov 0.0   ;;  %v74_v1 = vld [vmem:[%s850_s3 + $0x8] sm:$0xff]  ;;  %v73_v2 = vld [vmem:[%s850_s3] sm:$0xff]  ;;  %vm87_vm0 = vcmask 64512  }
  0x38   :  { %155 = vmatprep.mubr.f32.mxu0 %v723_v0  ;;  %v72_v3 = vld [vmem:[#allocation2] sm:$0xff]  ;;  %91 = vmatprep.subr.mxu0 %v74_v1  ;;  %v165_v4 = vld [vmem:[#allocation5 + $0x8] sm:$0xff]  ;;  %v164_v6 = vld [vmem:[#allocation5] sm:$0xff]  ;;  %vm434_vm1 = vcmask 31744  }
  0x39   :  { %v167_v5 = vld [vmem:[#allocation5 + $0x18] sm:$0xff]  ;;  %92 = vmatpush1.msra.mxu0 %v73_v2  ;;  %v166_v8 = vld [vmem:[#allocation5 + $0x10] sm:$0xff]  ;;  %v169_v9 = vld [vmem:[#allocation5 + $0x28] sm:$0xff] }
  0x3a   :  { %v505_v7 = vpack.c.bf16 %v167_v5, %v165_v4  ;;  %v171_v10 = vld [vmem:[#allocation5 + $0x38] sm:$0xff]  ;;  %467 = vmatmul.mubr.msk.f32.vlgmr.msra.gmra.mrb[0].mxu0 %vm87_vm0, %v72_v3  ;;  %v507_v11 = vpack.c.bf16 %v166_v8, %v164_v6  ;;  %v168_v13 = vld [vmem:[#allocation5 + $0x20] sm:$0xff]  ;;  %v170_v14 = vld [vmem:[#allocation5 + $0x30] sm:$0xff] }
  0x3b   :  { %v509_v12 = vpack.c.bf16 %v171_v10, %v169_v9  ;;  %v173_v15 = vld [vmem:[#allocation5 + $0x48] sm:$0xff]  ;;  %v175_v16 = vld [vmem:[#allocation5 + $0x58] sm:$0xff]  ;;  %v511_v17 = vpack.c.bf16 %v170_v14, %v168_v13  ;;  %v172_v19 = vld [vmem:[#allocation5 + $0x40] sm:$0xff] }
  0x3c   :  { %506 = vmatprep.subr.bf16.mxu1 %v505_v7  ;;  %v513_v18 = vpack.c.bf16 %v175_v16, %v173_v15  ;;  %v174_v20 = vld [vmem:[#allocation5 + $0x50] sm:$0xff]  ;;  %v177_v21 = vld [vmem:[#allocation5 + $0x68] sm:$0xff]  ;;  %v179_v22 = vld [vmem:[#allocation5 + $0x78] sm:$0xff] }
  0x3d   :  { %508 = vmatpush1.bf16.msra.mxu1 %v507_v11  ;;  %v515_v23 = vpack.c.bf16 %v174_v20, %v172_v19  ;;  %v517_v24 = vpack.c.bf16 %v179_v22, %v177_v21  ;;  %v176_v25 = vld [vmem:[#allocation5 + $0x60] sm:$0xff]  ;;  %v178_v26 = vld [vmem:[#allocation5 + $0x70] sm:$0xff]  ;;  %v181_v27 = vld [vmem:[#allocation5 + $0x88] sm:$0xff] }
  0x3e   :  { %510 = vmatprep.subr.bf16.mxu1 %v509_v12  ;;  %v183_v28 = vld [vmem:[#allocation5 + $0x98] sm:$0xff]  ;;  %v519_v29 = vpack.c.bf16 %v178_v26, %v176_v25  ;;  %v180_v31 = vld [vmem:[#allocation5 + $0x80] sm:$0xff]  ;;  %v182_v32 = vld [vmem:[#allocation5 + $0x90] sm:$0xff] }
  0x3f   :  { %v521_v30 = vpack.c.bf16 %v183_v28, %v181_v27  ;;  %v185_v33 = vld [vmem:[#allocation5 + $0xa8] sm:$0xff]  ;;  %v187_v34 = vld [vmem:[#allocation5 + $0xb8] sm:$0xff]  ;;  %v523_v35 = vpack.c.bf16 %v182_v32, %v180_v31  ;;  %v184_v37 = vld [vmem:[#allocation5 + $0xa0] sm:$0xff] }
  0x40   :  { %v525_v36 = vpack.c.bf16 %v187_v34, %v185_v33  ;;  %v186_v38 = vld [vmem:[#allocation5 + $0xb0] sm:$0xff]  ;;  %v189_v39 = vld [vmem:[#allocation5 + $0xc8] sm:$0xff]  ;;  %v191_v40 = vld [vmem:[#allocation5 + $0xd8] sm:$0xff] }
  0x41   :  { %512 = vmatpush1.bf16.msra.mxu1 %v511_v17  ;;  %v527_v41 = vpack.c.bf16 %v186_v38, %v184_v37  ;;  %v529_v42 = vpack.c.bf16 %v191_v40, %v189_v39  ;;  %v188_v43 = vld [vmem:[#allocation5 + $0xc0] sm:$0xff]  ;;  %v190_v44 = vld [vmem:[#allocation5 + $0xd0] sm:$0xff]  ;;  %v193_v45 = vld [vmem:[#allocation5 + $0xe8] sm:$0xff] }
  0x42   :  { %514 = vmatprep.subr.bf16.mxu1 %v513_v18  ;;  %v195_v46 = vld [vmem:[#allocation5 + $0xf8] sm:$0xff]  ;;  %v531_v47 = vpack.c.bf16 %v190_v44, %v188_v43  ;;  %v192_v49 = vld [vmem:[#allocation5 + $0xe0] sm:$0xff]  ;;  %v194_v50 = vld [vmem:[#allocation5 + $0xf0] sm:$0xff] }
  0x43   :  { %v533_v48 = vpack.c.bf16 %v195_v46, %v193_v45  ;;  %v197_v51 = vld [vmem:[#allocation5 + $0x108] sm:$0xff]  ;;  %v199_v52 = vld [vmem:[#allocation5 + $0x118] sm:$0xff]  ;;  %v535_v53 = vpack.c.bf16 %v194_v50, %v192_v49  ;;  %v196_v55 = vld [vmem:[#allocation5 + $0x100] sm:$0xff] }
  0x44   :  { %v537_v54 = vpack.c.bf16 %v199_v52, %v197_v51  ;;  %v198_v56 = vld [vmem:[#allocation5 + $0x110] sm:$0xff]  ;;  %v201_v57 = vld [vmem:[#allocation5 + $0x128] sm:$0xff]  ;;  %v203_v58 = vld [vmem:[#allocation5 + $0x138] sm:$0xff] }
  0x45   :  { %516 = vmatpush1.bf16.msra.mxu1 %v515_v23  ;;  %v539_v59 = vpack.c.bf16 %v198_v56, %v196_v55  ;;  %v541_v60 = vpack.c.bf16 %v203_v58, %v201_v57  ;;  %v200_v61 = vld [vmem:[#allocation5 + $0x120] sm:$0xff]  ;;  %v202_v62 = vld [vmem:[#allocation5 + $0x130] sm:$0xff]  ;;  %v205_v63 = vld [vmem:[#allocation5 + $0x148] sm:$0xff] }
  0x46   :  { %518 = vmatprep.subr.bf16.mxu1 %v517_v24  ;;  %v207_v0 = vld [vmem:[#allocation5 + $0x158] sm:$0xff]  ;;  %v543_v1 = vpack.c.bf16 %v202_v62, %v200_v61  ;;  %v204_v3 = vld [vmem:[#allocation5 + $0x140] sm:$0xff]  ;;  %v206_v4 = vld [vmem:[#allocation5 + $0x150] sm:$0xff] }
  0x47   :  { %v545_v2 = vpack.c.bf16 %v207_v0, %v205_v63  ;;  %v209_v5 = vld [vmem:[#allocation5 + $0x168] sm:$0xff]  ;;  %v211_v6 = vld [vmem:[#allocation5 + $0x178] sm:$0xff]  ;;  %v547_v7 = vpack.c.bf16 %v206_v4, %v204_v3  ;;  %v208_v9 = vld [vmem:[#allocation5 + $0x160] sm:$0xff] }
  0x48   :  { %v549_v8 = vpack.c.bf16 %v211_v6, %v209_v5  ;;  %v210_v10 = vld [vmem:[#allocation5 + $0x170] sm:$0xff]  ;;  %v213_v12 = vld [vmem:[#allocation5 + $0x188] sm:$0xff]  ;;  %v215_v13 = vld [vmem:[#allocation5 + $0x198] sm:$0xff] }
  0x49   :  { %520 = vmatpush1.bf16.msra.mxu1 %v519_v29  ;;  %v551_v11 = vpack.c.bf16 %v210_v10, %v208_v9  ;;  %v553_v14 = vpack.c.bf16 %v215_v13, %v213_v12  ;;  %v212_v15 = vld [vmem:[#allocation5 + $0x180] sm:$0xff]  ;;  %v214_v16 = vld [vmem:[#allocation5 + $0x190] sm:$0xff]  ;;  %v217_v18 = vld [vmem:[#allocation5 + $0x1a8] sm:$0xff] }
  0x4a   :  { %522 = vmatprep.subr.bf16.mxu1 %v521_v30  ;;  %v555_v17 = vpack.c.bf16 %v214_v16, %v212_v15  ;;  %v219_v19 = vld [vmem:[#allocation5 + $0x1b8] sm:$0xff]  ;;  %v216_v21 = vld [vmem:[#allocation5 + $0x1a0] sm:$0xff]  ;;  %v218_v22 = vld [vmem:[#allocation5 + $0x1b0] sm:$0xff] }
  0x4b   :  { %v557_v20 = vpack.c.bf16 %v219_v19, %v217_v18  ;;  %v559_v23 = vpack.c.bf16 %v218_v22, %v216_v21  ;;  %v221_v24 = vld [vmem:[#allocation5 + $0x1c8] sm:$0xff]  ;;  %v223_v25 = vld [vmem:[#allocation5 + $0x1d8] sm:$0xff]  ;;  %v220_v26 = vld [vmem:[#allocation5 + $0x1c0] sm:$0xff] }
  0x4c   :  { %v561_v27 = vpack.c.bf16 %v223_v25, %v221_v24  ;;  %v222_v28 = vld [vmem:[#allocation5 + $0x1d0] sm:$0xff]  ;;  %v225_v29 = vld [vmem:[#allocation5 + $0x1e8] sm:$0xff]  ;;  %v227_v30 = vld [vmem:[#allocation5 + $0x1f8] sm:$0xff] }
  0x4d   :  { %524 = vmatpush1.bf16.msra.mxu1 %v523_v35  ;;  %v563_v31 = vpack.c.bf16 %v222_v28, %v220_v26  ;;  %v565_v32 = vpack.c.bf16 %v227_v30, %v225_v29  ;;  %v224_v33 = vld [vmem:[#allocation5 + $0x1e0] sm:$0xff]  ;;  %v226_v34 = vld [vmem:[#allocation5 + $0x1f0] sm:$0xff]  ;;  %v330_v37 = vld [vmem:[#allocation7 + $0x88] sm:$0xff] }
  0x4e   :  { %526 = vmatprep.subr.bf16.mxu1 %v525_v36  ;;  %v567_v35 = vpack.c.bf16 %v226_v34, %v224_v33  ;;  %v329_v36 = vld [vmem:[#allocation7 + $0x80] sm:$0xff]  ;;  %v314_v40 = vld [vmem:[#allocation7 + $0x8] sm:$0xff]  ;;  %v315_v45 = vld [vmem:[#allocation7 + $0x10] sm:$0xff] }
  0x4f   :  { %v313_v38 = vld [vmem:[#allocation7] sm:$0xff]  ;;  %v569_v39 = vpack.c.bf16 %v330_v37, %v329_v36  ;;  %v316_v46 = vld [vmem:[#allocation7 + $0x18] sm:$0xff]  ;;  %v318_v52 = vld [vmem:[#allocation7 + $0x28] sm:$0xff] }
  0x50   :  { %v571_v43 = vpack.c.bf16 %v314_v40, %v313_v38  ;;  %v575_v49 = vpack.c.bf16 %v316_v46, %v315_v45  ;;  %v317_v51 = vld [vmem:[#allocation7 + $0x20] sm:$0xff]  ;;  %v319_v57 = vld [vmem:[#allocation7 + $0x30] sm:$0xff]  ;;  %v320_v58 = vld [vmem:[#allocation7 + $0x38] sm:$0xff] }
  0x51   :  { %528 = vmatpush1.bf16.msra.mxu1 %v527_v41  ;;  %v331_v41 = vld [vmem:[#allocation7 + $0x90] sm:$0xff]  ;;  %570 = vmatprep.subr.bf16.mxu0 %v569_v39  ;;  %v579_v55 = vpack.c.bf16 %v318_v52, %v317_v51  ;;  %v75_v63 = vld [vmem:[%s851_s4] sm:$0x3]  ;;  %v337_v9 = vld [vmem:[#allocation7 + $0xc0] sm:$0xff] }
  0x52   :  { %530 = vmatprep.subr.bf16.mxu1 %v529_v42  ;;  %v332_v42 = vld [vmem:[#allocation7 + $0x98] sm:$0xff]  ;;  %572 = vmatpush3.bf16.msra.mxu0 %v571_v43  ;;  %v338_v10 = vld [vmem:[#allocation7 + $0xc8] sm:$0xff]  ;;  %v321_v12 = vld [vmem:[#allocation7 + $0x40] sm:$0xff] }
  0x53   :  { %v573_v44 = vpack.c.bf16 %v332_v42, %v331_v41  ;;  %v322_v13 = vld [vmem:[#allocation7 + $0x48] sm:$0xff]  ;;  %v339_v15 = vld [vmem:[#allocation7 + $0xd0] sm:$0xff]  ;;  %v340_v16 = vld [vmem:[#allocation7 + $0xd8] sm:$0xff]  ;;  %v724_v42 = vmov 4  }
  0x54   :  { %v323_v18 = vld [vmem:[#allocation7 + $0x50] sm:$0xff]  ;;  %v324_v19 = vld [vmem:[#allocation7 + $0x58] sm:$0xff]  ;;  %v341_v21 = vld [vmem:[#allocation7 + $0xe0] sm:$0xff]  ;;  %611 = vset.pattern.permute.xlu0 %v724_v42 }
  0x55   :  { %532 = vmatpush1.bf16.msra.mxu1 %v531_v47  ;;  %v333_v47 = vld [vmem:[#allocation7 + $0xa0] sm:$0xff]  ;;  %574 = vmatprep.subr.bf16.mxu0 %v573_v44  ;;  %v342_v22 = vld [vmem:[#allocation7 + $0xe8] sm:$0xff]  ;;  %v343_v26 = vld [vmem:[#allocation7 + $0xf0] sm:$0xff] }
  0x56   :  { %534 = vmatprep.subr.bf16.mxu1 %v533_v48  ;;  %v334_v48 = vld [vmem:[#allocation7 + $0xa8] sm:$0xff]  ;;  %576 = vmatpush3.bf16.msra.mxu0 %v575_v49  ;;  %v593_v24 = vpack.c.bf16 %v342_v22, %v341_v21  ;;  %v327_v30 = vld [vmem:[#allocation7 + $0x70] sm:$0xff]  ;;  %v228_v33 = vld [vmem:[%s853_s6] sm:$0x3] }
  0x57   :  { %v577_v50 = vpack.c.bf16 %v334_v48, %v333_v47  ;;  %v326_v25 = vld [vmem:[#allocation7 + $0x68] sm:$0xff]  ;;  %v468_v44 = vld [vmem:[%s855_s8] ss:$0 sm:$0xff]  ;;  %s725_s8 = smov [#allocation8]  }
  0x58   :  { %v423_v48 = vld [vmem:[%s848_s1] sm:$0xff]  ;;  %s457_s14 = sshll.u32 %s725_s8, 4  ;;  %s458_s14 = int_to_ptr.vmem [resolvable:$true] %s457_s14 }
  0x59   :  { %536 = vmatpush1.bf16.msra.mxu1 %v535_v53  ;;  %v335_v53 = vld [vmem:[#allocation7 + $0xb0] sm:$0xff]  ;;  %578 = vmatprep.subr.bf16.mxu0 %v577_v50  ;;  %v469_v51 = vld [vmem:[%s849_s2] ss:$0 sm:$0xff]  ;;  %s688_s1 = scalar_lea.vmem %s458_s14, 128  ;;  %p693_p11 = scmp.lt.s32.totalorder %s458_s14, %s458_s14 }
  0x5a   :  { %538 = vmatprep.subr.bf16.mxu1 %v537_v54  ;;  %v336_v54 = vld [vmem:[#allocation7 + $0xb8] sm:$0xff]  ;;  %580 = vmatpush3.bf16.msra.mxu0 %v579_v55  ;;  %p689_p10 = scmp.ne.s32.totalorder %s458_s14, %s688_s1  ;;  %p694_p12 = scmp.lt.s32.totalorder %s688_s1, %s688_s1 }
  0x5b   :  { %v581_v56 = vpack.c.bf16 %v336_v54, %v335_v53 }
  0x5c   :  { %p695_p13 = por %p694_p12, %p693_p11 }
  0x5d   :  { %540 = vmatpush1.bf16.msra.mxu1 %v539_v59  ;;  %v583_v59 = vpack.c.bf16 %v320_v58, %v319_v57  ;;  %582 = vmatprep.subr.bf16.mxu0 %v581_v56 }
  0x5e   :  { %542 = vmatprep.subr.bf16.mxu1 %v541_v60  ;;  %v77_v60 = vlaneseq  ;;  %p696_p0 = pnand %p695_p13, %p689_p10 }
  0x5f   :  { %584 = vmatpush3.bf16.msra.mxu0 %v583_v59 }
  0x60   :  { %v78_v61 = vshrl.u32 %v77_v60, 7  ;;  %v439_v55 = vand.u32 127, %v77_v60 }
  0x61   :  { %544 = vmatpush1.bf16.msra.mxu1 %v543_v1 }
  0x62   :  { %546 = vmatprep.subr.bf16.mxu1 %v545_v2  ;;  %v79_v62 = vsub.s32 0, %v78_v61  ;;  %v83_v0 = vsub.s32 1, %v78_v61  ;;  %vm442_vm2 = vcmp.eq.s32.totalorder %v439_v55, 1  ;;  %vm440_vm3 = vcmp.eq.s32.totalorder %v439_v55, 0 }
  0x64   :  { %v80_v1 = vrot.slane %v75_v63, %v79_v62  ;;  %v84_v2 = vrot.slane %v75_v63, %v83_v0  ;;  %v233_v34 = vrot.slane %v228_v33, %v79_v62 }
  0x65   :  { %548 = vmatpush1.bf16.msra.mxu1 %v547_v7 }
  0x66   :  { %550 = vmatprep.subr.bf16.mxu1 %v549_v8 }
  0x69   :  { %552 = vmatpush1.bf16.msra.mxu1 %v551_v11  ;;  %v585_v11 = vpack.c.bf16 %v338_v10, %v337_v9 }
  0x6a   :  { %554 = vmatprep.subr.bf16.mxu1 %v553_v14  ;;  %v587_v14 = vpack.c.bf16 %v322_v13, %v321_v12 }
  0x6b   :  { %586 = vmatprep.subr.bf16.mxu0 %v585_v11 }
  0x6c   :  { %588 = vmatpush3.bf16.msra.mxu0 %v587_v14 }
  0x6d   :  { %556 = vmatpush1.bf16.msra.mxu1 %v555_v17  ;;  %v589_v17 = vpack.c.bf16 %v340_v16, %v339_v15 }
  0x6e   :  { %558 = vmatprep.subr.bf16.mxu1 %v557_v20  ;;  %v591_v20 = vpack.c.bf16 %v324_v19, %v323_v18 }
  0x6f   :  { %590 = vmatprep.subr.bf16.mxu0 %v589_v17 }
  0x70   :  { %592 = vmatpush3.bf16.msra.mxu0 %v591_v20 }
  0x71   :  { %560 = vmatpush1.bf16.msra.mxu1 %v559_v23  ;;  %v325_v23 = vld [vmem:[#allocation7 + $0x60] sm:$0xff]  ;;  %594 = vmatprep.subr.bf16.mxu0 %v593_v24 }
  0x72   :  { %562 = vmatprep.subr.bf16.mxu1 %v561_v27  ;;  %v344_v27 = vld [vmem:[#allocation7 + $0xf8] sm:$0xff]  ;;  %v595_v28 = vpack.c.bf16 %v326_v25, %v325_v23 }
  0x73   :  { %v597_v29 = vpack.c.bf16 %v344_v27, %v343_v26 }
  0x74   :  { %596 = vmatpush3.bf16.msra.mxu0 %v595_v28 }
  0x75   :  { %564 = vmatpush1.bf16.msra.mxu1 %v563_v31  ;;  %v328_v31 = vld [vmem:[#allocation7 + $0x78] sm:$0xff]  ;;  %598 = vmatprep.subr.bf16.mxu0 %v597_v29 }
  0x76   :  { %566 = vmatprep.subr.bf16.mxu1 %v565_v32  ;;  %v599_v32 = vpack.c.bf16 %v328_v31, %v327_v30 }
  0x78   :  { %600 = vmatpush3.bf16.msra.mxu0 %v599_v32 }
  0x79   :  { %568 = vmatpush1.bf16.msra.mxu1 %v567_v35  ;;  %v237_v35 = vrot.slane %v228_v33, %v83_v0 }
 0x10d   :  { %v157_v3 = vpop.f32.mrb[0].mxu0 }
 0x10e   :  { %v158_v4 = vadd.f32 %v157_v3, %v80_v1  ;;  %v159_v5 = vpop.f32.mrb[1].mxu0 }
 0x10f   :  { %v160_v6 = vadd.f32 %v159_v5, %v84_v2 }
 0x111   :  { %612 = vtanh.f32 %v160_v6 }
 0x112   :  { %614 = vtanh.f32 %v158_v4 }
 0x11b   :  { %v613_v7 = vpop.eup %612 }
 0x11c   :  { %v615_v8 = vpop.eup %614  ;;  %304 = vmatprep.mubr.f32.mxu1 %v613_v7 }
 0x11d   :  { %305 = vmatmul.mubr.f32.vlgmr.msra.gmra.mrb[0].mxu1 %v615_v8 }
 0x1f0   :  { %v306_v36 = vpop.f32.mrb[0].mxu1 }
 0x1f1   :  { %v307_v37 = vadd.f32 %v306_v36, %v233_v34  ;;  %v308_v38 = vpop.f32.mrb[1].mxu1 }
 0x1f2   :  { %v309_v39 = vadd.f32 %v308_v38, %v237_v35 }
 0x1f4   :  { %616 = vtanh.f32 %v309_v39 }
 0x1f5   :  { %618 = vtanh.f32 %v307_v37 }
 0x1fe   :  { %v617_v40 = vpop.eup %616 }
 0x1ff   :  { %v619_v41 = vpop.eup %618  ;;  %416 = vmatprep.mubr.f32.mxu0 %v617_v40 }
 0x200   :  { %417 = vmatmul.mubr.f32.vlgmr.msra.gmra.mrb[2].mxu0 %v619_v41 }
 0x2d3   :  { %v502_v43 = vpop.f32.mrb[2].mxu0 }
 0x2d4   :  { %v503_v45 = vpop.f32.mrb[3].mxu0 }
 0x2d5   :  { %v504_v46 = vadd.f32 %v503_v45, %v502_v43 }
 0x2d7   :  { %v419_v47 = vadd.f32 %v504_v46, %v468_v44 }
 0x2d9   :  { %620 = vtanh.f32 %v419_v47 }
 0x2e3   :  { %v621_v49 = vpop.eup %620 }
 0x2e4   :  { %v424_v50 = vsub.f32 %v423_v48, %v621_v49 }
 0x2e6   :  { %v425_v52 = vmul.f32 %v424_v50, %v424_v50 }
 0x2e8   :  { %v433_v53 = vmul.f32 %v469_v51, %v425_v52 }
 0x2ea   :  { %v435_v54 = vsel %vm434_vm1, %v433_v53, 0.0 }
 0x2eb   :  { %436 = vadd.xlane.f32.xlu0 %v435_v54 }
 0x301   :  { %445 = vperm.xlu0 %611, %v419_v47  }
 0x378   :  { %v437_v56 = vpop.xlane.xlu0 %436 }
 0x379   :  { %v441_v57 = vmul.f32 -0.5, %v437_v56 }
 0x380   :  { %v446_v58 = vpop.permute.xlu0 %445 }
 0x381   :  { %v448_v59 = vsel %vm442_vm2, %v446_v58, 0.0 }
 0x382   :  { %v449_v61 = vsel %vm440_vm3, %v441_v57, %v448_v59 }
 0x383   :  { %450 = vst [vmem:[#allocation8] sm:$0xff] %v449_v61 }
 0x384   :  { %699 = shalt.err (!%p696_p0)
}
 0x385   :  { %s700_s16 = scalar_lea.hbm %s856_s9, 128 }
 0x386   :  { %p701_p1 = scmp.ne.s32.totalorder %s856_s9, %s700_s16  ;;  %p704_p2 = scmp.lt.u32.totalorder %s700_s16, %s856_s9 }
 0x388   :  { %p706_p3 = pnand %p704_p2, %p701_p1 }
 0x38a   :  { %709 = shalt.err (!%p706_p3)
}
 0x38b   :  { %460 = dma.vmem_to_hbm [thread:$0]  %s458_s14, 128, %s856_s9, [#allocation4]  }
 0x38c   :  { %714 = dma.done.wait [#allocation4], 128  }
 0x38d   :  { %715 = vsyncadd [#allocation4], 4294967168 }
 0x38e   :  { %464 = vsyncpa [#allocation3], 1 }
 0x38f   :  { %465 = vsyncpa [#allocation6], 1 }
 0x390   :  { %466 = vsyncpa [#allocation4], 1 }

</bundles_post_ra>
